<compile_context>
chip_gen: v7x
topology: tpu7x:2x2x1
jax: 0.10.0
libtpu: 0.0.40
codegen_flags: <defaults>
</compile_context>

<pallas_src>
import jax
import jax.numpy as jnp
from jax.experimental import pallas as pl
from jax.experimental.pallas import tpu as pltpu


def bottleneck_kernel(x_ref, w1_ref, w2_ref, w3_ref,
                      bn0s_ref, bn0b_ref, bn1b_ref, bn2b_ref, o_ref):
    # x_ref block: (Bt, H, W, Cin) — Bt images per grid step.
    Bt, H, W, Cin = x_ref.shape
    P = w1_ref.shape[1]            # planes
    Kpad = w2_ref.shape[0]         # im2col contraction dim (>= 9P)
    Cout = w3_ref.shape[1]         # planes * expansion (== Cin here)
    M = Bt * H * W

    # bn0 + relu on the VPU in f32.  The pre-bn0 x is the residual identity
    # (downsample is None), so keep it live for the final add.
    x = x_ref[...].astype(jnp.float32).reshape(M, Cin)
    h = jnp.maximum(x * bn0s_ref[...] + bn0b_ref[...], 0.0)

    # conv1 (1x1): bn1 scale pre-folded into w1 columns; bias + relu here.
    h = jnp.dot(h.astype(jnp.bfloat16), w1_ref[...],
                preferred_element_type=jnp.float32)                # (M, P) f32
    h = jnp.maximum(h + bn1b_ref[...], 0.0)

    # conv2 (3x3, stride=1, pad=1) as a single im2col matmul: value-level
    # zero pad + nine shifted windows concatenated along channels into one
    # lane-major (M, Kpad) slab, then one K=Kpad MXU pass.  Construction is
    # done in f32 and cast to bf16 once at the matmul (bf16 construction
    # would halve the gather traffic; kept f32 for layout robustness).
    hb = h.reshape(Bt, H, W, P)
    zr = jnp.zeros((Bt, 1, W, P), jnp.float32)
    zc = jnp.zeros((Bt, H + 2, 1, P), jnp.float32)
    hp = jnp.concatenate([zr, hb, zr], axis=1)                     # (Bt, H+2, W,   P)
    hp = jnp.concatenate([zc, hp, zc], axis=2)                     # (Bt, H+2, W+2, P)
    taps = [hp[:, dy:dy + H, dx:dx + W, :]
            for dy in range(3) for dx in range(3)]
    if Kpad > 9 * P:   # K alignment pad so every MXU pass runs with full K
        taps.append(jnp.zeros((Bt, H, W, Kpad - 9 * P), jnp.float32))
    slab = jnp.concatenate(taps, axis=-1).reshape(M, Kpad)         # (M, Kpad)
    h = jnp.dot(slab.astype(jnp.bfloat16), w2_ref[...],
                preferred_element_type=jnp.float32)                # (M, P) f32

    # bn2 bias + relu (scale folded into w2's output channels), conv3 (1x1).
    h = jnp.maximum(h + bn2b_ref[...], 0.0)
    h = jnp.dot(h.astype(jnp.bfloat16), w3_ref[...],
                preferred_element_type=jnp.float32)                # (M, Cout) f32

    # residual add in f32 (identity = pre-bn0 x, Cin == Cout), bf16 store.
    out = h + x
    o_ref[...] = out.reshape(Bt, H, W, Cout).astype(o_ref.dtype)


def bottleneck_forward(x_nchw, params, *, batch_tile=1):
    """Bottleneck forward (start_block=False, end_block=False,
    exclude_bn0=False, downsample=None, stride=1).  Input is NCHW."""
    x = jnp.transpose(x_nchw, (0, 2, 3, 1))                 # NCHW -> NHWC
    N, H, W, Cin = x.shape
    P = params["w1"].shape[1]
    Cout = params["w3"].shape[1]
    assert Cin == Cout, "identity residual requires inplanes == planes*expansion"
    assert N % batch_tile == 0
    Bt = batch_tile
    # TODO(synk): for channel counts that are not multiples of 128, fold W into
    # the last (lane) dim in the wrapper (x -> (N, H, W*Cin)) so the output
    # store stays lane-dense; with C % 128 == 0 plain NHWC is already dense.

    # Host-side weight rewrite: fold bn1/bn2 scales into the conv weights (in
    # f32, then cast), reshape w2 to im2col form (9P, P) and zero-pad its
    # contraction dim to a multiple of 128 when 9P > 128, cast weights to bf16.
    w1 = (params["w1"] * params["bn1_s"]).astype(jnp.bfloat16)            # (Cin, P)
    w2 = (params["w2"] * params["bn2_s"][0]).reshape(9 * P, P)            # (9P, P)
    Kc = 9 * P
    Kpad = Kc if Kc <= 128 else ((Kc + 127) // 128) * 128
    if Kpad > Kc:
        w2 = jnp.concatenate([w2, jnp.zeros((Kpad - Kc, P), w2.dtype)], axis=0)
    w2 = w2.astype(jnp.bfloat16)                                          # (Kpad, P)
    w3 = params["w3"].astype(jnp.bfloat16)                                # (P, Cout)
    bn0_s = params["bn0_s"].astype(jnp.float32)
    bn0_b = params["bn0_b"].astype(jnp.float32)
    bn1_b = params["bn1_b"].astype(jnp.float32)
    bn2_b = params["bn2_b"].astype(jnp.float32)

    # bf16 activations across HBM (block is HBM-bandwidth-bound at real shapes).
    x_bf16 = x.astype(jnp.bfloat16)

    def full(shape):
        return pl.BlockSpec(shape, lambda n, _nd=len(shape): (0,) * _nd)

    # Explicit VMEM budget: double-buffered bf16 I/O blocks + weights + f32
    # intermediates, with margin, clamped to v7x's 64 MiB physical VMEM.
    io_bytes = 2 * 2 * Bt * H * W * (Cin + Cout)              # dbl-buffered bf16 in+out
    wgt_bytes = 2 * (w1.size + w2.size + w3.size) + 4 * 2 * (Cin + P)
    live_bytes = 4 * Bt * H * W * (Cin + 2 * P + Kpad + Cout)
    vmem_limit = int(min(64 * 1024 * 1024,
                         max(32 * 1024 * 1024,
                             4 * (io_bytes + wgt_bytes + live_bytes))))

    flops = 2 * N * H * W * (Cin * P + Kc * P + P * Cout)
    bytes_accessed = 2 * N * H * W * (Cin + Cout) + wgt_bytes

    out = pl.pallas_call(
        bottleneck_kernel,
        out_shape=jax.ShapeDtypeStruct((N, H, W, Cout), jnp.bfloat16),
        grid=(N // Bt,),
        in_specs=[
            pl.BlockSpec((Bt, H, W, Cin), lambda n: (n, 0, 0, 0)),
            full((Cin, P)),
            full((Kpad, P)),
            full((P, Cout)),
            full((1, Cin)), full((1, Cin)),
            full((1, P)), full((1, P)),
        ],
        out_specs=pl.BlockSpec((Bt, H, W, Cout), lambda n: (n, 0, 0, 0)),
        compiler_params=pltpu.CompilerParams(
            dimension_semantics=("parallel",),        # batch axis independent
            vmem_limit_bytes=vmem_limit),
        cost_estimate=pl.CostEstimate(
            flops=flops, transcendentals=0, bytes_accessed=bytes_accessed),
    )(x_bf16, w1, w2, w3, bn0_s, bn0_b, bn1_b, bn2_b)

    out = out.astype(x_nchw.dtype)
    return jnp.transpose(out, (0, 3, 1, 2))                  # NHWC -> NCHW


def reference_forward(x_nchw, p):
    """Pure-JAX f32 reference with the module's math (NHWC internally)."""
    x = jnp.transpose(x_nchw, (0, 2, 3, 1)).astype(jnp.float32)
    N, H, W, Cin = x.shape
    h = jnp.maximum(x * p["bn0_s"][0] + p["bn0_b"][0], 0.0)
    h = jnp.einsum("nhwc,cd->nhwd", h, p["w1"], precision="highest")
    h = jnp.maximum(h * p["bn1_s"][0] + p["bn1_b"][0], 0.0)
    hp = jnp.pad(h, ((0, 0), (1, 1), (1, 1), (0, 0)))
    acc = 0.0
    for dy in range(3):
        for dx in range(3):
            acc = acc + jnp.einsum("nhwc,cd->nhwd",
                                   hp[:, dy:dy + H, dx:dx + W, :],
                                   p["w2"][dy, dx], precision="highest")
    h = jnp.maximum(acc * p["bn2_s"][0] + p["bn2_b"][0], 0.0)
    h = jnp.einsum("nhwc,cd->nhwd", h, p["w3"], precision="highest")
    out = h + x
    return jnp.transpose(out, (0, 3, 1, 2))


def make_params(key, inplanes, planes, expansion=4, eps=1e-5):
    cout = planes * expansion
    ks = jax.random.split(key, 16)

    def bn_fold(kg, kb, km, kv, c):
        gamma = 1.0 + 0.1 * jax.random.normal(kg, (c,), jnp.float32)
        beta = 0.1 * jax.random.normal(kb, (c,), jnp.float32)
        mean = 0.1 * jax.random.normal(km, (c,), jnp.float32)
        var = jnp.abs(jax.random.normal(kv, (c,), jnp.float32)) + 0.5
        scale = gamma / jnp.sqrt(var + eps)
        bias = beta - mean * scale
        return scale.reshape(1, c), bias.reshape(1, c)

    bn0_s, bn0_b = bn_fold(ks[0], ks[1], ks[2], ks[3], inplanes)
    bn1_s, bn1_b = bn_fold(ks[4], ks[5], ks[6], ks[7], planes)
    bn2_s, bn2_b = bn_fold(ks[8], ks[9], ks[10], ks[11], planes)

    # conv weights stored as (Cin, Cout) / (kh, kw, Cin, Cout) for matmul form
    w1 = 0.2 * jax.random.normal(ks[12], (inplanes, planes), jnp.float32)
    w2 = 0.2 * jax.random.normal(ks[13], (3, 3, planes, planes), jnp.float32)
    w3 = 0.2 * jax.random.normal(ks[14], (planes, cout), jnp.float32)

    return dict(w1=w1, w2=w2, w3=w3,
                bn0_s=bn0_s, bn0_b=bn0_b,
                bn1_s=bn1_s, bn1_b=bn1_b,
                bn2_s=bn2_s, bn2_b=bn2_b)


if __name__ == "__main__":
    # inplanes == planes * expansion so the identity residual holds; channel
    # counts are multiples of 128 so the NHWC lane dim is dense (per review;
    # sub-128 channel counts would fold W into the lane dim instead).
    # batch_tile=1 keeps >= 2 grid steps per TensorCore on v7x.
    N, inplanes, planes, H, W = 4, 128, 32, 8, 8
    key = jax.random.PRNGKey(0)
    kx, kp = jax.random.split(key)
    x = jax.random.normal(kx, (N, inplanes, H, W), jnp.float32)   # NCHW, like PyTorch
    params = make_params(kp, inplanes, planes)

    out = jax.block_until_ready(bottleneck_forward(x, params, batch_tile=1))
    ref = jax.block_until_ready(reference_forward(x, params))
    assert out.shape == (N, planes * 4, H, W)

    # bf16 activations/weights on the MXU vs. an f32 reference -> loose abs
    # bound plus a tight relative (Frobenius) bound.
    err = float(jnp.max(jnp.abs(out - ref)))
    rel = float(jnp.linalg.norm((out - ref).astype(jnp.float32))
                / jnp.linalg.norm(ref.astype(jnp.float32)))
    assert err < 2.5e-1 and rel < 2e-2, (err, rel)
    print("KERNEL_OK")
</pallas_src>

<mosaic_0001>
module attributes {stable_mosaic.version = 11 : i64} {
  func.func @bottleneck_kernel(%arg0: i32, %arg1: memref<1x8x8x128xbf16, #tpu.memory_space<vmem>>, %arg2: memref<128x32xbf16, #tpu.memory_space<vmem>>, %arg3: memref<384x32xbf16, #tpu.memory_space<vmem>>, %arg4: memref<32x128xbf16, #tpu.memory_space<vmem>>, %arg5: memref<1x128xf32, #tpu.memory_space<vmem>>, %arg6: memref<1x128xf32, #tpu.memory_space<vmem>>, %arg7: memref<1x32xf32, #tpu.memory_space<vmem>>, %arg8: memref<1x32xf32, #tpu.memory_space<vmem>>, %arg9: memref<1x8x8x128xbf16, #tpu.memory_space<vmem>>) attributes {dimension_semantics = [#tpu.dimension_semantics<parallel>], iteration_bounds = array<i64: 4>, scalar_prefetch = 0 : i64, scratch_operands = 0 : i64, tpu.core_type = #tpu.core_type<tc>, window_params = [{transform_indices = @transform_0, window_bounds = array<i64: 1, 8, 8, 128>}, {pipeline_mode = #tpu.pipeline_mode<synchronous>, transform_indices = @transform_1, window_bounds = array<i64: 128, 32>}, {pipeline_mode = #tpu.pipeline_mode<synchronous>, transform_indices = @transform_2, window_bounds = array<i64: 384, 32>}, {pipeline_mode = #tpu.pipeline_mode<synchronous>, transform_indices = @transform_3, window_bounds = array<i64: 32, 128>}, {pipeline_mode = #tpu.pipeline_mode<synchronous>, transform_indices = @transform_4, window_bounds = array<i64: 1, 128>}, {pipeline_mode = #tpu.pipeline_mode<synchronous>, transform_indices = @transform_5, window_bounds = array<i64: 1, 128>}, {pipeline_mode = #tpu.pipeline_mode<synchronous>, transform_indices = @transform_6, window_bounds = array<i64: 1, 32>}, {pipeline_mode = #tpu.pipeline_mode<synchronous>, transform_indices = @transform_7, window_bounds = array<i64: 1, 32>}, {transform_indices = @transform_8, window_bounds = array<i64: 1, 8, 8, 128>}]} {
    %c0 = arith.constant 0 : index
    %c0_0 = arith.constant 0 : index
    %c0_1 = arith.constant 0 : index
    %c0_2 = arith.constant 0 : index
    %0 = vector.load %arg1[%c0, %c0_0, %c0_1, %c0_2] : memref<1x8x8x128xbf16, #tpu.memory_space<vmem>>, vector<1x8x8x128xbf16>
    %1 = arith.extf %0 : vector<1x8x8x128xbf16> to vector<1x8x8x128xf32>
    %2 = vector.shape_cast %1 : vector<1x8x8x128xf32> to vector<64x128xf32>
    %c0_3 = arith.constant 0 : index
    %c0_4 = arith.constant 0 : index
    %3 = vector.load %arg5[%c0_3, %c0_4] : memref<1x128xf32, #tpu.memory_space<vmem>>, vector<1x128xf32>
    %4 = vector.broadcast %3 : vector<1x128xf32> to vector<64x128xf32>
    %5 = arith.mulf %2, %4 : vector<64x128xf32>
    %c0_5 = arith.constant 0 : index
    %c0_6 = arith.constant 0 : index
    %6 = vector.load %arg6[%c0_5, %c0_6] : memref<1x128xf32, #tpu.memory_space<vmem>>, vector<1x128xf32>
    %7 = vector.broadcast %6 : vector<1x128xf32> to vector<64x128xf32>
    %8 = arith.addf %5, %7 : vector<64x128xf32>
    %cst = arith.constant 0.000000e+00 : f32
    %9 = vector.broadcast %cst : f32 to vector<64x128xf32>
    %10 = arith.maximumf %8, %9 : vector<64x128xf32>
    %11 = arith.truncf %10 : vector<64x128xf32> to vector<64x128xbf16>
    %c0_7 = arith.constant 0 : index
    %c0_8 = arith.constant 0 : index
    %12 = vector.load %arg2[%c0_7, %c0_8] : memref<128x32xbf16, #tpu.memory_space<vmem>>, vector<128x32xbf16>
    %cst_9 = arith.constant dense<0.000000e+00> : vector<64x32xf32>
    %13 = tpu.matmul %11, %12, %cst_9 {dimension_numbers = #tpu.dot_dimension_numbers<[1], [0], [0], [1], [0, 0, 1, 1], [], []>} : vector<64x128xbf16>, vector<128x32xbf16>, vector<64x32xf32> -> vector<64x32xf32>
    %c0_10 = arith.constant 0 : index
    %c0_11 = arith.constant 0 : index
    %14 = vector.load %arg7[%c0_10, %c0_11] : memref<1x32xf32, #tpu.memory_space<vmem>>, vector<1x32xf32>
    %15 = vector.broadcast %14 : vector<1x32xf32> to vector<64x32xf32>
    %16 = arith.addf %13, %15 : vector<64x32xf32>
    %cst_12 = arith.constant 0.000000e+00 : f32
    %17 = vector.broadcast %cst_12 : f32 to vector<64x32xf32>
    %18 = arith.maximumf %16, %17 : vector<64x32xf32>
    %19 = vector.shape_cast %18 : vector<64x32xf32> to vector<1x8x8x32xf32>
    %cst_13 = arith.constant 0.000000e+00 : f32
    %20 = vector.broadcast %cst_13 : f32 to vector<1x1x8x32xf32>
    %cst_14 = arith.constant 0.000000e+00 : f32
    %21 = vector.broadcast %cst_14 : f32 to vector<1x10x1x32xf32>
    %22 = tpu.concatenate %20, %19, %20 in 1 : vector<1x1x8x32xf32>, vector<1x8x8x32xf32>, vector<1x1x8x32xf32> -> vector<1x10x8x32xf32>
    %23 = tpu.concatenate %21, %22, %21 in 2 : vector<1x10x1x32xf32>, vector<1x10x8x32xf32>, vector<1x10x1x32xf32> -> vector<1x10x10x32xf32>
    %24 = vector.extract_strided_slice %23 {offsets = [0, 0, 0, 0], sizes = [1, 8, 8, 32], strides = [1, 1, 1, 1]} : vector<1x10x10x32xf32> to vector<1x8x8x32xf32>
    %25 = vector.extract_strided_slice %23 {offsets = [0, 0, 1, 0], sizes = [1, 8, 8, 32], strides = [1, 1, 1, 1]} : vector<1x10x10x32xf32> to vector<1x8x8x32xf32>
    %26 = vector.extract_strided_slice %23 {offsets = [0, 0, 2, 0], sizes = [1, 8, 8, 32], strides = [1, 1, 1, 1]} : vector<1x10x10x32xf32> to vector<1x8x8x32xf32>
    %27 = vector.extract_strided_slice %23 {offsets = [0, 1, 0, 0], sizes = [1, 8, 8, 32], strides = [1, 1, 1, 1]} : vector<1x10x10x32xf32> to vector<1x8x8x32xf32>
    %28 = vector.extract_strided_slice %23 {offsets = [0, 1, 1, 0], sizes = [1, 8, 8, 32], strides = [1, 1, 1, 1]} : vector<1x10x10x32xf32> to vector<1x8x8x32xf32>
    %29 = vector.extract_strided_slice %23 {offsets = [0, 1, 2, 0], sizes = [1, 8, 8, 32], strides = [1, 1, 1, 1]} : vector<1x10x10x32xf32> to vector<1x8x8x32xf32>
    %30 = vector.extract_strided_slice %23 {offsets = [0, 2, 0, 0], sizes = [1, 8, 8, 32], strides = [1, 1, 1, 1]} : vector<1x10x10x32xf32> to vector<1x8x8x32xf32>
    %31 = vector.extract_strided_slice %23 {offsets = [0, 2, 1, 0], sizes = [1, 8, 8, 32], strides = [1, 1, 1, 1]} : vector<1x10x10x32xf32> to vector<1x8x8x32xf32>
    %32 = vector.extract_strided_slice %23 {offsets = [0, 2, 2, 0], sizes = [1, 8, 8, 32], strides = [1, 1, 1, 1]} : vector<1x10x10x32xf32> to vector<1x8x8x32xf32>
    %cst_15 = arith.constant 0.000000e+00 : f32
    %33 = vector.broadcast %cst_15 : f32 to vector<1x8x8x96xf32>
    %34 = tpu.concatenate %24, %25, %26, %27, %28, %29, %30, %31, %32, %33 in 3 : vector<1x8x8x32xf32>, vector<1x8x8x32xf32>, vector<1x8x8x32xf32>, vector<1x8x8x32xf32>, vector<1x8x8x32xf32>, vector<1x8x8x32xf32>, vector<1x8x8x32xf32>, vector<1x8x8x32xf32>, vector<1x8x8x32xf32>, vector<1x8x8x96xf32> -> vector<1x8x8x384xf32>
    %35 = vector.shape_cast %34 : vector<1x8x8x384xf32> to vector<64x384xf32>
    %36 = arith.truncf %35 : vector<64x384xf32> to vector<64x384xbf16>
    %c0_16 = arith.constant 0 : index
    %c0_17 = arith.constant 0 : index
    %37 = vector.load %arg3[%c0_16, %c0_17] : memref<384x32xbf16, #tpu.memory_space<vmem>>, vector<384x32xbf16>
    %cst_18 = arith.constant dense<0.000000e+00> : vector<64x32xf32>
    %38 = tpu.matmul %36, %37, %cst_18 {dimension_numbers = #tpu.dot_dimension_numbers<[1], [0], [0], [1], [0, 0, 1, 1], [], []>} : vector<64x384xbf16>, vector<384x32xbf16>, vector<64x32xf32> -> vector<64x32xf32>
    %c0_19 = arith.constant 0 : index
    %c0_20 = arith.constant 0 : index
    %39 = vector.load %arg8[%c0_19, %c0_20] : memref<1x32xf32, #tpu.memory_space<vmem>>, vector<1x32xf32>
    %40 = vector.broadcast %39 : vector<1x32xf32> to vector<64x32xf32>
    %41 = arith.addf %38, %40 : vector<64x32xf32>
    %cst_21 = arith.constant 0.000000e+00 : f32
    %42 = vector.broadcast %cst_21 : f32 to vector<64x32xf32>
    %43 = arith.maximumf %41, %42 : vector<64x32xf32>
    %44 = arith.truncf %43 : vector<64x32xf32> to vector<64x32xbf16>
    %c0_22 = arith.constant 0 : index
    %c0_23 = arith.constant 0 : index
    %45 = vector.load %arg4[%c0_22, %c0_23] : memref<32x128xbf16, #tpu.memory_space<vmem>>, vector<32x128xbf16>
    %cst_24 = arith.constant dense<0.000000e+00> : vector<64x128xf32>
    %46 = tpu.matmul %44, %45, %cst_24 {dimension_numbers = #tpu.dot_dimension_numbers<[1], [0], [0], [1], [0, 0, 1, 1], [], []>} : vector<64x32xbf16>, vector<32x128xbf16>, vector<64x128xf32> -> vector<64x128xf32>
    %47 = arith.addf %46, %2 : vector<64x128xf32>
    %48 = vector.shape_cast %47 : vector<64x128xf32> to vector<1x8x8x128xf32>
    %49 = arith.truncf %48 : vector<1x8x8x128xf32> to vector<1x8x8x128xbf16>
    %c0_25 = arith.constant 0 : index
    %c0_26 = arith.constant 0 : index
    %c0_27 = arith.constant 0 : index
    %c0_28 = arith.constant 0 : index
    %50 = vector.load %arg9[%c0_25, %c0_26, %c0_27, %c0_28] : memref<1x8x8x128xbf16, #tpu.memory_space<vmem>>, vector<1x8x8x128xbf16>
    tpu.vector_store %arg9[%c0_25, %c0_26, %c0_27, %c0_28], %49 {strides = array<i32>} : memref<1x8x8x128xbf16, #tpu.memory_space<vmem>>, vector<1x8x8x128xbf16>,
    return
  }
  func.func @transform_0(%arg0: i32) -> (i32, i32, i32, i32) {
    %c0_i32 = arith.constant 0 : i32
    %c0_i32_0 = arith.constant 0 : i32
    %c0_i32_1 = arith.constant 0 : i32
    %c0_i32_2 = arith.constant 0 : i32
    return %arg0, %c0_i32, %c0_i32_0, %c0_i32_1 : i32, i32, i32, i32
  }
  func.func @transform_1(%arg0: i32) -> (i32, i32) {
    %c0_i32 = arith.constant 0 : i32
    %c0_i32_0 = arith.constant 0 : i32
    %c0_i32_1 = arith.constant 0 : i32
    return %c0_i32, %c0_i32_0 : i32, i32
  }
  func.func @transform_2(%arg0: i32) -> (i32, i32) {
    %c0_i32 = arith.constant 0 : i32
    %c0_i32_0 = arith.constant 0 : i32
    %c0_i32_1 = arith.constant 0 : i32
    return %c0_i32, %c0_i32_0 : i32, i32
  }
  func.func @transform_3(%arg0: i32) -> (i32, i32) {
    %c0_i32 = arith.constant 0 : i32
    %c0_i32_0 = arith.constant 0 : i32
    %c0_i32_1 = arith.constant 0 : i32
    return %c0_i32, %c0_i32_0 : i32, i32
  }
  func.func @transform_4(%arg0: i32) -> (i32, i32) {
    %c0_i32 = arith.constant 0 : i32
    %c0_i32_0 = arith.constant 0 : i32
    %c0_i32_1 = arith.constant 0 : i32
    return %c0_i32, %c0_i32_0 : i32, i32
  }
  func.func @transform_5(%arg0: i32) -> (i32, i32) {
    %c0_i32 = arith.constant 0 : i32
    %c0_i32_0 = arith.constant 0 : i32
    %c0_i32_1 = arith.constant 0 : i32
    return %c0_i32, %c0_i32_0 : i32, i32
  }
  func.func @transform_6(%arg0: i32) -> (i32, i32) {
    %c0_i32 = arith.constant 0 : i32
    %c0_i32_0 = arith.constant 0 : i32
    %c0_i32_1 = arith.constant 0 : i32
    return %c0_i32, %c0_i32_0 : i32, i32
  }
  func.func @transform_7(%arg0: i32) -> (i32, i32) {
    %c0_i32 = arith.constant 0 : i32
    %c0_i32_0 = arith.constant 0 : i32
    %c0_i32_1 = arith.constant 0 : i32
    return %c0_i32, %c0_i32_0 : i32, i32
  }
  func.func @transform_8(%arg0: i32) -> (i32, i32, i32, i32) {
    %c0_i32 = arith.constant 0 : i32
    %c0_i32_0 = arith.constant 0 : i32
    %c0_i32_1 = arith.constant 0 : i32
    %c0_i32_2 = arith.constant 0 : i32
    return %arg0, %c0_i32, %c0_i32_0, %c0_i32_1 : i32, i32, i32, i32
  }
}

</mosaic_0001>

<bundles_post_ra>
// kernel: tpu_custom_call.1
= control target key start
LH: loop header
LB: loop body
LE: loop exit
PB: predicated region body
PF: predicated region fallthrough
CT: control target
= control target key end

     0   :  { %13 = vsyncpa [#allocation3], 0  ;;  %s2492_s0 = inlined_call_operand.vmem [shape: bf16[4,8,8,128], index: 0, kind: input, shape index: {}]   ;;  %s2493_s1 = inlined_call_operand.vmem [shape: bf16[128,32], index: 1, kind: input, shape index: {}]   ;;  %s2494_s2 = inlined_call_operand.vmem [shape: bf16[384,32], index: 2, kind: input, shape index: {}]   ;;  %s2495_s3 = inlined_call_operand.vmem [shape: bf16[32,128], index: 3, kind: input, shape index: {}]   ;;  %s2496_s4 = inlined_call_operand.vmem [shape: f32[1,128], index: 4, kind: input, shape index: {}]   ;;  %s2497_s5 = inlined_call_operand.vmem [shape: f32[1,128], index: 5, kind: input, shape index: {}]   ;;  %s2498_s6 = inlined_call_operand.vmem [shape: f32[1,32], index: 6, kind: input, shape index: {}]   ;;  %s2499_s7 = inlined_call_operand.vmem [shape: f32[1,32], index: 7, kind: input, shape index: {}]   ;;  %s2500_s8 = inlined_call_operand.hbm [shape: bf16[4,8,8,128], index: 8, kind: output, shape index: {}]  }
   0x1   :  { %15 = vsyncpa [#allocation3 + $0x1], 0  ;;  %s1937_s27 = smov 0   ;;  %s1939_s28 = smov 0  }
   0x2   :  { %s1941_s29 = smov 0   ;;  %s1943_s30 = smov 0  }
   0x3 LB: > { %s1958_s9 = sadd.s32 4294967295, %s1884_s30   ;;  %s1384_s10 = sadd.s32 4294967294, %s1884_s30   ;;  %s1884_s30 = sphi %s1943_s30, %s2508_s30   ;;  %s1880_s29 = sphi %s1941_s29, %s2507_s29   ;;  %s1876_s28 = sphi %s1939_s28, %s2506_s28   ;;  %s1872_s27 = sphi %s1937_s27, %s2505_s27  }
   0x4   : > { %s1962_s11 = sadd.s32 1, %s1884_s30   ;;  %s201_s12 = sadd.s32 1, %s1880_s29 }
   0x5   : > { %s198_s13 = ssub.s32 %s1884_s30, %s1962_s11  ;;  %p211_p0 = scmp.ne.s32.totalorder %s1880_s29, %s1876_s28 }
   0x6   : > { %p199_p1 = scmp.eq.s32.totalorder %s198_s13, 0  ;;  %p212_p2 = scmp.eq.s32.totalorder %s1958_s9, 3 }
   0x7   : > { %p217_p3 = scmp.ne.s32.totalorder %s1876_s28, %s1872_s27  ;;  %p218_p4 = scmp.eq.s32.totalorder %s1384_s10, 3 }
   0x8   : > { %s1973_s14 = scalar_select %p199_p1, %s1880_s29, %s201_s12  }
   0x9   : > { %p1975_p5 = por %p212_p2, %p211_p0  ;;  %p1979_p6 = por %p218_p4, %p217_p3 }
   0xa   : > { %p1387_p7 = scmp.ge.s32.totalorder %s1884_s30, 1  ;;  %p265_p8 = scmp.lt.s32.totalorder %s1884_s30, 5 }
   0xc   : > { %p266_p9 = pnand %p1387_p7, %p265_p8 }
   0xd   : > { %v1788_v0 = vld [vmem:[%s2493_s1] sm:$0xff] (!%p266_p9)   ;;  %p299_p10 = scmp.lt.s32.totalorder (!%p266_p9), %s1958_s9, 3  ;;  %v1789_v1 = vld [vmem:[%s2493_s1 + $0x8] sm:$0xff] (!%p266_p9)   ;;  %v1790_v2 = vld [vmem:[%s2493_s1 + $0x10] sm:$0xff] (!%p266_p9)   ;;  %vm534_vm0 = vcmask (!%p266_p9), 1040384   ;;  %vm569_vm1 = vcmask (!%p266_p9), 1046528  }
   0xe   : > { %269 = sbr.rel (%p266_p9) target bundleno = 898 (0x382), region = 52  ;;  %1564 = vmatprep.subr.bf16.mxu0 (!%p266_p9), %v1788_v0  ;;  %v1791_v3 = vld [vmem:[%s2493_s1 + $0x18] sm:$0xff] (!%p266_p9)   ;;  %v1391_v5 = vld [vmem:[%s2496_s4] ss:$0 sm:$0xff] (!%p266_p9)  ;;  %v1793_v30 = vld [vmem:[%s2493_s1 + $0x28] sm:$0xff] (!%p266_p9)   ;;  %vm618_vm2 = vcmask (!%p266_p9), 1045504  }
   0xf   : > { %1565 = vmatpush3.bf16.msra.mxu0 (!%p266_p9), %v1788_v0  ;;  %v1392_v10 = vld [vmem:[%s2497_s5] ss:$0 sm:$0xff] (!%p266_p9)  ;;  %v1794_v37 = vld [vmem:[%s2493_s1 + $0x30] sm:$0xff] (!%p266_p9)   ;;  %v1795_v38 = vld [vmem:[%s2493_s1 + $0x38] sm:$0xff] (!%p266_p9)   ;;  %vm787_vm3 = vcmask (!%p266_p9), 261120   ;;  %s1887_s19 = smov (!%p266_p9), 96  }
  0x10   : > { %1566 = vmatprep.subr.bf16.mxu0 (!%p266_p9), %v1789_v1  ;;  %v1792_v17 = vld [vmem:[%s2493_s1 + $0x20] sm:$0xff] (!%p266_p9)   ;;  %v1797_v48 = vld [vmem:[%s2494_s2 + $0x88] sm:$0xff] (!%p266_p9)   ;;  %v1798_v51 = vld [vmem:[%s2494_s2 + $0x90] sm:$0xff] (!%p266_p9)   ;;  %s1889_s25 = smov (!%p266_p9), 64   ;;  %vm796_vm5 = vcmask (!%p266_p9), 523264   ;;  %vm805_vm6 = vcmask (!%p266_p9), 785408  }
  0x11   : > { %v1796_v43 = vld [vmem:[%s2494_s2 + $0x80] sm:$0xff] (!%p266_p9)   ;;  %v1799_v53 = vld [vmem:[%s2494_s2 + $0x98] sm:$0xff] (!%p266_p9)   ;;  %v1801_v55 = vld [vmem:[%s2494_s2 + $0xa8] sm:$0xff] (!%p266_p9)   ;;  %s296_s23 = sand.u32 (!%p266_p9), 1, %s1876_s28   ;;  %s1451_s13 = sshll.u32 (!%p266_p9), %s1958_s9, 9 }
  0x12   : > { %v1800_v54 = vld [vmem:[%s2494_s2 + $0xa0] sm:$0xff] (!%p266_p9)   ;;  %v1802_v56 = vld [vmem:[%s2494_s2 + $0xb0] sm:$0xff] (!%p266_p9)   ;;  %v1803_v57 = vld [vmem:[%s2494_s2 + $0xb8] sm:$0xff] (!%p266_p9)   ;;  %s2445_s18 = scalar_lea.hbm (!%p266_p9), %s2500_s8, %s1451_s13  ;;  %s1890_s20 = smov (!%p266_p9), [#allocation2]  }
  0x13   : > { %1567 = vmatpush3.bf16.msra.mxu0 (!%p266_p9), %v1789_v1  ;;  %v1804_v58 = vld [vmem:[%s2494_s2 + $0x40] sm:$0xff] (!%p266_p9)   ;;  %v1806_v60 = vld [vmem:[%s2494_s2 + $0x48] sm:$0xff] (!%p266_p9)   ;;  %v1808_v62 = vld [vmem:[%s2494_s2 + $0x50] sm:$0xff] (!%p266_p9)   ;;  %v1886_v1 = vmov (!%p266_p9), 0.0  }
  0x14   : > { %1568 = vmatprep.subr.bf16.mxu0 (!%p266_p9), %v1790_v2  ;;  %v1805_v59 = vld [vmem:[%s2494_s2] sm:$0xff] (!%p266_p9)   ;;  %1506 = vmatprep.subr.bf16.mxu1 (!%p266_p9), %v1804_v58  ;;  %v1807_v61 = vld [vmem:[%s2494_s2 + $0x8] sm:$0xff] (!%p266_p9)   ;;  %v1809_v63 = vld [vmem:[%s2494_s2 + $0x10] sm:$0xff] (!%p266_p9)  }
  0x15   : > { %s300_s21 = scalar_select %p299_p10, %s1958_s9, 3  ;;  %1507 = vmatpush3.bf16.msra.mxu1 %v1805_v59  ;;  %v1393_v0 = vld [vmem:[%s2498_s6] ss:$0 sm:$0xff]  ;;  %vm2212_vm4 = vmpackc.low %vm787_vm3, %vm787_vm3 }
  0x16   : > { %1508 = vmatprep.subr.bf16.mxu1 %v1806_v60  ;;  %s2449_s9 = scalar_lea.sflag [#allocation3], %s296_s23 }
  0x17   : > { %s1450_s24 = sshll.u32 %s300_s21, 5  ;;  %1569 = vmatpush3.bf16.msra.mxu0 %v1790_v2  ;;  %v516_v2 = vrot.slane %v1886_v1, 7  ;;  %s1826_s21 = sshll.u32 %s1890_s20, 4  ;;  %s1827_s21 = int_to_ptr.vmem [resolvable:$false] %s1826_s21 }
  0x18   : > { %s1999_s10 = scalar_lea.vmem %s2492_s0, %s1450_s24  ;;  %1570 = vmatprep.subr.bf16.mxu0 %v1791_v3  ;;  %s1888_s24 = smov 32  }
  0x19   : > { %v2005_v4 = vld [vmem:[%s1999_s10] sm:$0xff]   ;;  %v2013_v8 = vld [vmem:[%s1999_s10 + $0x8] sm:$0xff]   ;;  %v2016_v9 = vld [vmem:[%s1999_s10 + $0x10] sm:$0xff]   ;;  %1509 = vmatpush3.bf16.msra.mxu1 %v1807_v61  ;;  %s1828_s22 = scalar_lea.vmem %s1827_s21, 1024 }
  0x1a   : > { %v1454_v6 = vunpack.c.l.bf16 %v2005_v4  ;;  %v1455_v7 = vunpack.c.h.bf16 %v2005_v4  ;;  %v1458_v11 = vunpack.c.l.bf16 %v2013_v8  ;;  %v1459_v12 = vunpack.c.h.bf16 %v2013_v8  ;;  %v2044_v36 = vld [vmem:[%s1999_s10 + $0x18] sm:$0xff]   ;;  %1510 = vmatprep.subr.bf16.mxu1 %v1808_v62  ;;  %v1814_v62 = vld [vmem:[%s2494_s2 + $0x68] sm:$0xff]  }
  0x1b   : > { %v1462_v13 = vunpack.c.l.bf16 %v2016_v9  ;;  %v1463_v14 = vunpack.c.h.bf16 %v2016_v9  ;;  %1571 = vmatpush3.bf16.msra.mxu0 %v1791_v3  ;;  %v1466_v39 = vunpack.c.l.bf16 %v2044_v36  ;;  %v1467_v40 = vunpack.c.h.bf16 %v2044_v36 }
  0x1c   : > { %v328_v15 = vmul.f32 %v1454_v6, %v1391_v5  ;;  %v329_v16 = vmul.f32 %v1455_v7, %v1391_v5  ;;  %v330_v18 = vmul.f32 %v1458_v11, %v1391_v5  ;;  %v331_v19 = vmul.f32 %v1459_v12, %v1391_v5  ;;  %1572 = vmatprep.subr.bf16.mxu0 %v1792_v17 }
  0x1d   : > { %v332_v20 = vmul.f32 %v1462_v13, %v1391_v5  ;;  %v333_v21 = vmul.f32 %v1463_v14, %v1391_v5  ;;  %v334_v41 = vmul.f32 %v1466_v39, %v1391_v5  ;;  %v335_v42 = vmul.f32 %v1467_v40, %v1391_v5  ;;  %1511 = vmatpush3.bf16.msra.mxu1 %v1809_v63  ;;  %v1815_v63 = vld [vmem:[%s2494_s2 + $0x28] sm:$0xff]  }
  0x1e   : > { %v343_v22 = vadd.f32 %v1392_v10, %v328_v15  ;;  %v344_v23 = vadd.f32 %v1392_v10, %v329_v16  ;;  %v345_v24 = vadd.f32 %v1392_v10, %v330_v18  ;;  %v346_v25 = vadd.f32 %v1392_v10, %v331_v19  ;;  %v1810_v15 = vld [vmem:[%s2494_s2 + $0x58] sm:$0xff]  }
  0x1f   : > { %v347_v26 = vadd.f32 %v1392_v10, %v332_v20  ;;  %v348_v27 = vadd.f32 %v1392_v10, %v333_v21  ;;  %1573 = vmatpush3.bf16.msra.mxu0 %v1792_v17  ;;  %v349_v45 = vadd.f32 %v1392_v10, %v334_v41  ;;  %v350_v46 = vadd.f32 %v1392_v10, %v335_v42  ;;  %v1811_v16 = vld [vmem:[%s2494_s2 + $0x18] sm:$0xff]  }
  0x20   : > { %v351_v28 = vmax.f32 %v343_v22, 0.0  ;;  %v352_v29 = vmax.f32 %v344_v23, 0.0  ;;  %v353_v31 = vmax.f32 %v345_v24, 0.0  ;;  %v354_v32 = vmax.f32 %v346_v25, 0.0  ;;  %1574 = vmatprep.subr.bf16.mxu0 %v1793_v30  ;;  %1512 = vmatprep.subr.bf16.mxu1 %v1810_v15 }
  0x21   : > { %v355_v34 = vmax.f32 %v347_v26, 0.0  ;;  %v356_v35 = vmax.f32 %v348_v27, 0.0  ;;  %v357_v49 = vmax.f32 %v349_v45, 0.0  ;;  %v358_v50 = vmax.f32 %v350_v46, 0.0  ;;  %1513 = vmatpush3.bf16.msra.mxu1 %v1811_v16 }
  0x22   : > { %v359_v33 = vpack.c.bf16 %v352_v29, %v351_v28  ;;  %v360_v44 = vpack.c.bf16 %v354_v32, %v353_v31  ;;  %v2110_v22 = vsel %vm534_vm0, 0.0, %v516_v2  ;;  %v544_v23 = vsel %vm534_vm0, %v516_v2, 0.0 }
  0x23   : > { %1575 = vmatpush3.bf16.msra.mxu0 %v1793_v30  ;;  %v361_v47 = vpack.c.bf16 %v356_v35, %v355_v34  ;;  %v362_v52 = vpack.c.bf16 %v358_v50, %v357_v49  ;;  %v570_v29 = vrot.slane %v2110_v22, 1  ;;  %v571_v30 = vrot.slane %v544_v23, 1 }
  0x24   : > { %1580 = vmatprep.mubr.bf16.mxu0 %v359_v33  ;;  %1576 = vmatprep.subr.bf16.mxu0 %v1794_v37  ;;  %v620_v32 = vrot.slane %v544_v23, 2  ;;  %v619_v33 = vrot.slane %v2110_v22, 2 }
  0x27   : > { %1577 = vmatpush3.bf16.msra.mxu0 %v1794_v37 }
  0x28   : > { %1578 = vmatprep.subr.bf16.mxu0 %v1795_v38 }
  0x2b   : > { %1579 = vmatpush3.bf16.msra.mxu0 %v1795_v38  ;;  %v1812_v38 = vld [vmem:[%s2494_s2 + $0x60] sm:$0xff]  }
  0x2c   : > { %1588 = vmatprep.subr.bf16.mxu0 %v1796_v43  ;;  %1514 = vmatprep.subr.bf16.mxu1 %v1812_v38 }
  0x2e   : > { %1581 = vmatmul.mubr.bf16.vlgmr.msra.gmra.mrb[0].mxu0 %v360_v44  ;;  %v1813_v44 = vld [vmem:[%s2494_s2 + $0x20] sm:$0xff]  }
  0x2f   : > { %1584 = vmatprep.mubr.bf16.mxu0 %v361_v47  ;;  %1589 = vmatpush3.bf16.msra.mxu0 %v1796_v43  ;;  %v2137_v47 = vsel %vm569_vm1, %v570_v29, %v571_v30  ;;  %v1816_v30 = vld [vmem:[%s2494_s2 + $0x70] sm:$0xff]  }
  0x30   : > { %1590 = vmatprep.subr.bf16.mxu0 %v1797_v48  ;;  %1515 = vmatpush3.bf16.msra.mxu1 %v1813_v44 }
  0x31   : > { %1516 = vmatprep.subr.bf16.mxu1 %v1814_v62 }
  0x33   : > { %1591 = vmatpush3.bf16.msra.mxu0 %v1797_v48 }
  0x34   : > { %1592 = vmatprep.subr.bf16.mxu0 %v1798_v51  ;;  %1517 = vmatpush3.bf16.msra.mxu1 %v1815_v63 }
  0x35   : > { %1518 = vmatprep.subr.bf16.mxu1 %v1816_v30 }
  0x36   : > { %1585 = vmatmul.mubr.bf16.gmra.mrb[4].mxu0 %v362_v52 }
  0x37   : > { %1593 = vmatpush3.bf16.msra.mxu0 %v1798_v51 }
  0x38   : > { %1594 = vmatprep.subr.bf16.mxu0 %v1799_v53 }
  0x3b   : > { %1595 = vmatpush3.bf16.msra.mxu0 %v1799_v53  ;;  %v2145_v53 = vsel %vm618_vm2, %v619_v33, %v620_v32 }
  0x3c   : > { %1596 = vmatprep.subr.bf16.mxu0 %v1800_v54 }
  0x3f   : > { %1597 = vmatpush3.bf16.msra.mxu0 %v1800_v54 }
  0x40   : > { %1598 = vmatprep.subr.bf16.mxu0 %v1801_v55 }
  0x43   : > { %1599 = vmatpush3.bf16.msra.mxu0 %v1801_v55 }
  0x44   : > { %1600 = vmatprep.subr.bf16.mxu0 %v1802_v56 }
  0x47   : > { %1601 = vmatpush3.bf16.msra.mxu0 %v1802_v56 }
  0x48   : > { %1602 = vmatprep.subr.bf16.mxu0 %v1803_v57 }
  0x4b   : > { %1603 = vmatpush3.bf16.msra.mxu0 %v1803_v57 }
 0x101   : > { %v1582_v3 = vpop.f32.mrb[0].mxu0 }
 0x102   : > { %v477_v5 = vadd.f32 %v1582_v3, %v1393_v0  ;;  %v468_v10 = vpop.f32.mrb[1].mxu0 }
 0x103   : > { %v469_v17 = vadd.f32 %v1393_v0, %v468_v10  ;;  %v1583_v18 = vpop.f32.mrb[2].mxu0 }
 0x104   : > { %v501_v19 = vmax.f32 %v477_v5, 0.0  ;;  %v480_v20 = vadd.f32 %v1583_v18, %v1393_v0  ;;  %v471_v21 = vpop.f32.mrb[3].mxu0 }
 0x105   : > { %v499_v24 = vmax.f32 %v469_v17, 0.0  ;;  %v472_v25 = vadd.f32 %v1393_v0, %v471_v21 }
 0x106   : > { %v519_v26 = vrot.slane %v501_v19, 7  ;;  %v502_v27 = vmax.f32 %v480_v20, 0.0 }
 0x107   : > { %v517_v28 = vrot.slane %v499_v24, 7  ;;  %v500_v35 = vmax.f32 %v472_v25, 0.0 }
 0x108   : > { %v520_v31 = vrot.slane %v502_v27, 7  ;;  %v2116_v34 = vsel %vm534_vm0, 0.0, %v519_v26  ;;  %v2131_v45 = vsel %vm534_vm0, %v519_v26, 0.0 }
 0x109   : > { %v1586_v37 = vpop.f32.mrb[4].mxu0  ;;  %v2122_v41 = vsel %vm534_vm0, %v517_v28, 0.0  ;;  %v2134_v46 = vsel %vm534_vm0, 0.0, %v517_v28  ;;  %v628_v49 = vrot.slane %v2116_v34, 2  ;;  %v518_v54 = vrot.slane %v500_v35, 7 }
 0x10a   : > { %v2125_v42 = vsel %vm534_vm0, 0.0, %v520_v31  ;;  %v484_v43 = vpop.f32.mrb[5].mxu0  ;;  %v574_v50 = vrot.slane %v2122_v41, 1  ;;  %v2142_v51 = vsel %vm534_vm0, %v520_v31, 0.0  ;;  %v493_v55 = vadd.f32 %v1586_v37, %v1393_v0  ;;  %v1817_v31 = vld [vmem:[%s2494_s2 + $0x30] sm:$0xff]  }
 0x10b   : > { %v1587_v48 = vpop.f32.mrb[6].mxu0  ;;  %v485_v56 = vadd.f32 %v1393_v0, %v484_v43  ;;  %v1668_v57 = vpack.i.bf16 %v2125_v42, %v2116_v34  ;;  %v629_v58 = vrot.slane %v2131_v45, 2  ;;  %v573_v59 = vrot.slane %v2134_v46, 1  ;;  %1519 = vmatpush3.bf16.msra.mxu1 %v1817_v31 }
 0x10c   : > { %v487_v52 = vpop.f32.mrb[7].mxu0  ;;  %v496_v60 = vadd.f32 %v1587_v48, %v1393_v0  ;;  %v2158_v1 = vsel %vm534_vm0, 0.0, %v518_v54  ;;  %v2161_v2 = vsel %vm534_vm0, %v518_v54, 0.0  ;;  %v505_v3 = vmax.f32 %v493_v55, 0.0 }
 0x10d   : > { %v488_v61 = vadd.f32 %v1393_v0, %v487_v52  ;;  %v503_v5 = vmax.f32 %v485_v56, 0.0  ;;  %1669 = vrot.lane.b32.xlu1 %v1668_v57, %s1887_s19  ;;  %v631_v0 = vrot.slane %v2125_v42, 2  ;;  %v632_v10 = vrot.slane %v2142_v51, 2 }
 0x10e   : > { %v625_v15 = vrot.slane %v2158_v1, 2  ;;  %v626_v16 = vrot.slane %v2161_v2, 2  ;;  %v523_v17 = vrot.slane %v505_v3, 7  ;;  %v2169_v19 = vsel %vm569_vm1, %v573_v59, %v574_v50  ;;  %v1818_v59 = vld [vmem:[%s2494_s2 + $0x78] sm:$0xff]  }
 0x10f   : > { %v521_v18 = vrot.slane %v503_v5, 7  ;;  %v506_v20 = vmax.f32 %v496_v60, 0.0  ;;  %v1683_v23 = vpack.i.bf16 %v2169_v19, %v2137_v47  ;;  %v504_v24 = vmax.f32 %v488_v61, 0.0  ;;  %v1819_v60 = vld [vmem:[%s2494_s2 + $0x38] sm:$0xff]   ;;  %1520 = vmatprep.subr.bf16.mxu1 %v1818_v59 }
 0x110   : > { %v2172_v21 = vsel %vm618_vm2, %v625_v15, %v626_v16  ;;  %v1673_v25 = vpack.i.bf16 %v2116_v34, %v2158_v1  ;;  %v2179_v26 = vsel %vm534_vm0, 0.0, %v523_v17  ;;  %v2182_v27 = vsel %vm534_vm0, %v523_v17, 0.0  ;;  %1521 = vmatpush3.bf16.msra.mxu1 %v1819_v60 }
 0x111   : > { %v2185_v28 = vsel %vm534_vm0, 0.0, %v521_v18  ;;  %v2188_v29 = vsel %vm534_vm0, %v521_v18, 0.0  ;;  %v2197_v32 = vsel %vm618_vm2, %v628_v49, %v629_v58  ;;  %v622_v33 = vrot.slane %v2134_v46, 2  ;;  %1684 = vrot.lane.b32.xlu0 %v1683_v23, %s1888_s24 }
 0x112   : > { %v623_v35 = vrot.slane %v2122_v41, 2  ;;  %1674 = vrot.lane.b32.xlu1 %v1673_v25, %s1889_s25  ;;  %v2204_v37 = vsel %vm618_vm2, %v631_v0, %v632_v10  ;;  %v640_v38 = vrot.slane %v2179_v26, 2  ;;  %v641_v43 = vrot.slane %v2182_v27, 2 }
 0x113   : > { %v634_v44 = vrot.slane %v2185_v28, 2  ;;  %v635_v48 = vrot.slane %v2188_v29, 2  ;;  %v576_v49 = vrot.slane %v2158_v1, 1  ;;  %v524_v50 = vrot.slane %v506_v20, 7 }
 0x114   : > { %v522_v52 = vrot.slane %v504_v24, 7  ;;  %v1428_v54 = vpack.c.bf16 %v2197_v32, %v2172_v21  ;;  %v577_v55 = vrot.slane %v2161_v2, 1  ;;  %v1693_v57 = vpack.i.bf16 %v2204_v37, %v2197_v32 }
 0x115   : > { %v2221_v56 = vsel %vm618_vm2, %v634_v44, %v635_v48  ;;  %v1678_v58 = vpack.i.bf16 %v2158_v1, %v2134_v46  ;;  %v2234_v61 = vsel %vm534_vm0, 0.0, %v524_v50  ;;  %v2237_v62 = vsel %vm534_vm0, %v524_v50, 0.0 }
 0x116   : > { %v2240_v63 = vsel %vm534_vm0, 0.0, %v522_v52  ;;  %v550_v2 = vsel %vm534_vm0, %v522_v52, 0.0  ;;  %1604 = vmatprep.mubr.msk.bf16.mxu0 %vm2212_vm4, %v1428_v54  ;;  %v579_v3 = vrot.slane %v2116_v34, 1  ;;  %v580_v5 = vrot.slane %v2131_v45, 1  ;;  %1694 = vrot.lane.b32.xlu0 %v1693_v57, %s1888_s24 }
 0x117   : > { %v642_v0 = vsel %vm618_vm2, %v640_v38, %v641_v43  ;;  %1679 = vrot.lane.b32.xlu1 %v1678_v58, %s1887_s19  ;;  %v624_v10 = vsel %vm618_vm2, %v622_v33, %v623_v35  ;;  %v704_v15 = vrot.slane %v2234_v61, 2  ;;  %v705_v16 = vrot.slane %v2237_v62, 2 }
 0x118   : > { %v637_v17 = vrot.slane %v2240_v63, 2  ;;  %v638_v18 = vrot.slane %v550_v2, 2  ;;  %v1431_v20 = vpack.c.bf16 %v2221_v56, %v2204_v37  ;;  %v1698_v45 = vpack.i.bf16 %v2172_v21, %v624_v10 }
 0x119   : > { %v1688_v24 = vpack.i.bf16 %v624_v10, %v2145_v53  ;;  %v2260_v25 = vsel %vm569_vm1, %v576_v49, %v577_v55  ;;  %v706_v31 = vsel %vm618_vm2, %v704_v15, %v705_v16  ;;  %v2268_v33 = vsel %vm569_vm1, %v579_v3, %v580_v5 }
 0x11a   : > { %v639_v23 = vsel %vm618_vm2, %v637_v17, %v638_v18  ;;  %1605 = vmatmul.mubr.msk.bf16.vlgmr.msra.gmra.mrb[8].mxu0 %vm2212_vm4, %v1431_v20  ;;  %1699 = vrot.lane.b32.xlu0 %v1698_v45, %s1888_s24  ;;  %v1713_v35 = vpack.i.bf16 %v2197_v32, %v2172_v21  ;;  %v1703_v38 = vpack.i.bf16 %v2268_v33, %v2260_v25  ;;  %v585_v32 = vrot.slane %v2185_v28, 1 }
 0x11b   : > { %v1434_v30 = vpack.c.bf16 %v642_v0, %v639_v23  ;;  %1689 = vrot.lane.b32.xlu1 %v1688_v24, %s1889_s25  ;;  %v1748_v43 = vpack.i.bf16 %v706_v31, %v642_v0  ;;  %v1743_v44 = vpack.i.bf16 %v2221_v56, %v2204_v37  ;;  %v1753_v48 = vpack.i.bf16 %v639_v23, %v2221_v56 }
 0x11c   : > { %v1437_v49 = vpack.c.bf16 %v2145_v53, %v706_v31  ;;  %v1773_v50 = vpack.i.bf16 %v642_v0, %v639_v23  ;;  %v1718_v21 = vpack.i.bf16 %v2185_v28, %v2125_v42  ;;  %v586_v52 = vrot.slane %v2188_v29, 1 }
 0x11d   : > { %1608 = vmatprep.mubr.msk.bf16.mxu0 %vm2212_vm4, %v1434_v30  ;;  %v582_v37 = vrot.slane %v2125_v42, 1  ;;  %v583_v53 = vrot.slane %v2142_v51, 1  ;;  %v1723_v54 = vpack.i.bf16 %v2179_v26, %v2240_v63  ;;  %v1728_v55 = vpack.i.bf16 %v2240_v63, %v2185_v28 }
 0x11e   : > { %1704 = vrot.lane.b32.xlu0 %v1703_v38, %s1887_s19  ;;  %v2297_v56 = vsel %vm569_vm1, %v585_v32, %v586_v52  ;;  %v591_v41 = vrot.slane %v2179_v26, 1  ;;  %v592_v57 = vrot.slane %v2182_v27, 1  ;;  %v588_v58 = vrot.slane %v2240_v63, 1 }
 0x11f   : > { %1709 = vrot.lane.b32.xlu1 %v1703_v38, %s1888_s24  ;;  %v2302_v29 = vsel %vm569_vm1, %v582_v37, %v583_v53  ;;  %v589_v59 = vrot.slane %v550_v2, 1  ;;  %v693_v2 = vrot.slane %v2234_v61, 1  ;;  %v694_v5 = vrot.slane %v2237_v62, 1 }
 0x120   : > { %v1733_v51 = vpack.i.bf16 %v2297_v56, %v2302_v29  ;;  %v2316_v3 = vsel %vm569_vm1, %v591_v41, %v592_v57  ;;  %v1763_v0 = vpack.i.bf16 %v2110_v22, %v2234_v61  ;;  %v1783_v10 = vpack.i.bf16 %v2234_v61, %v2179_v26 }
 0x121   : > { %v2313_v60 = vsel %vm569_vm1, %v588_v58, %v589_v59  ;;  %v2332_v15 = vsel %vm569_vm1, %v693_v2, %v694_v5 }
 0x122   : > { %1609 = vmatmul.mubr.msk.bf16.gmra.mrb[12].mxu0 %vm2212_vm4, %v1437_v49  ;;  %1719 = vrot.lane.b32.xlu0 %v1718_v21, %s1889_s25  ;;  %v1768_v27 = vpack.i.bf16 %v2316_v3, %v2313_v60  ;;  %v1778_v62 = vpack.i.bf16 %v2137_v47, %v2332_v15 }
 0x123   : > { %1714 = vrot.lane.b32.xlu1 %v1713_v35, %s1889_s25 }
 0x126   : > { %1724 = vrot.lane.b32.xlu0 %v1723_v54, %s1889_s25 }
 0x127   : > { %1729 = vrot.lane.b32.xlu1 %v1728_v55, %s1887_s19 }
 0x12a   : > { %1734 = vrot.lane.b32.xlu0 %v1733_v51, %s1887_s19 }
 0x12b   : > { %1739 = vrot.lane.b32.xlu1 %v1733_v51, %s1888_s24 }
 0x12e   : > { %1749 = vrot.lane.b32.xlu0 %v1748_v43, %s1888_s24 }
 0x12f   : > { %1744 = vrot.lane.b32.xlu1 %v1743_v44, %s1889_s25 }
 0x132   : > { %1754 = vrot.lane.b32.xlu0 %v1753_v48, %s1888_s24 }
 0x133   : > { %1769 = vrot.lane.b32.xlu1 %v1768_v27, %s1888_s24  ;;  %s1388_s24 = sshll.u32 %s296_s23, 5 }
 0x134   : > { %s298_s26 = scalar_lea.vmem [#allocation2], %s1388_s24 }
 0x135   : > { %s1322_s12 = sshll.u32 %s298_s26, 4  ;;  %s2440_s12 = int_to_ptr.vmem [resolvable:$true] %s1322_s12 }
 0x136   : > { %1759 = vrot.lane.b32.xlu0 %v1768_v27, %s1887_s19  ;;  %p1829_p0 = scmp.lt.s32.totalorder %s2440_s12, %s1827_s21 }
 0x137   : > { %1774 = vrot.lane.b32.xlu1 %v1773_v50, %s1889_s25 }
 0x13a   : > { %1764 = vrot.lane.b32.xlu0 %v1763_v0, %s1889_s25 }
 0x13b   : > { %1784 = vrot.lane.b32.xlu1 %v1783_v10, %s1887_s19 }
 0x13e   : > { %1779 = vrot.lane.b32.xlu0 %v1778_v62, %s1887_s19  ;;  %s1822_s19 = scalar_lea.vmem %s2440_s12, 512 }
 0x13f   : > { %p1823_p11 = scmp.ne.s32.totalorder %s2440_s12, %s1822_s19  ;;  %p1830_p1 = scmp.lt.s32.totalorder %s1828_s22, %s1822_s19 }
 0x141   : > { %p1824_p12 = pnand %p1823_p11, %p1975_p5  ;;  %p1831_p2 = por %p1830_p1, %p1829_p0 }
 0x143   : > { %p1825_p13 = pneg %p1824_p12 }
 0x145   : > { %p1832_p3 = pnand %p1831_p2, %p1825_p13 }
 0x17f   : > { %v2339_v16 = vpop.permute.xlu1 %1669 }
 0x183   : > { %v1685_v17 = vpop.permute.xlu0 %1684 }
 0x184   : > { %v1675_v18 = vpop.permute.xlu1 %1674  ;;  %v1687_v23 = vunpack.i.h.bf16 %v1685_v17  ;;  %v1686_v61 = vunpack.i.l.bf16 %v1685_v17 }
 0x185   : > { %v1677_v38 = vunpack.i.h.bf16 %v1675_v18  ;;  %v1676_v43 = vunpack.i.l.bf16 %v1675_v18 }
 0x186   : > { %v789_v48 = vsel %vm787_vm3, %v2134_v46, %v1687_v23  ;;  %v788_v49 = vsel %vm787_vm3, %v2110_v22, %v1686_v61 }
 0x188   : > { %v1695_v20 = vpop.permute.xlu0 %1694 }
 0x189   : > { %v1680_v45 = vpop.permute.xlu1 %1679  ;;  %v1696_v23 = vunpack.i.l.bf16 %v1695_v20 }
 0x18a   : > { %v1682_v32 = vunpack.i.h.bf16 %v1680_v45  ;;  %v1681_v52 = vunpack.i.l.bf16 %v1680_v45  ;;  %v1697_v45 = vunpack.i.h.bf16 %v1695_v20 }
 0x18c   : > { %v1700_v24 = vpop.permute.xlu0 %1699  ;;  %v817_v20 = vsel %vm787_vm3, %v2302_v29, %v1697_v45 }
 0x18d   : > { %v1702_v30 = vunpack.i.h.bf16 %v1700_v24  ;;  %v1701_v31 = vunpack.i.l.bf16 %v1700_v24  ;;  %v1690_v35 = vpop.permute.xlu1 %1689 }
 0x18e   : > { %v1692_v44 = vunpack.i.h.bf16 %v1690_v35  ;;  %v1691_v47 = vunpack.i.l.bf16 %v1690_v35 }
 0x18f   : > { %v814_v50 = vsel %vm787_vm3, %v2169_v19, %v1701_v31  ;;  %v815_v21 = vsel %vm787_vm3, %v2260_v25, %v1702_v30 }
 0x190   : > { %v797_v37 = vsel %vm796_vm5, %v788_v49, %v1691_v47  ;;  %v798_v53 = vsel %vm796_vm5, %v789_v48, %v1692_v44  ;;  %v1705_v54 = vpop.permute.xlu0 %1704  ;;  %v822_v46 = vsel %vm796_vm5, %v814_v50, %v1676_v43  ;;  %v823_v22 = vsel %vm796_vm5, %v815_v21, %v1677_v38 }
 0x191   : > { %v1707_v55 = vunpack.i.h.bf16 %v1705_v54  ;;  %v1706_v51 = vunpack.i.l.bf16 %v1705_v54  ;;  %v1710_v41 = vpop.permute.xlu1 %1709  ;;  %v806_v57 = vsel %vm805_vm6, %v797_v37, %v1681_v52  ;;  %v807_v19 = vsel %vm805_vm6, %v798_v53, %v1682_v32 }
 0x192   : > { %v846_v5 = vpack.c.bf16 %v807_v19, %v806_v57  ;;  %v1712_v0 = vunpack.i.h.bf16 %v1710_v41  ;;  %v1711_v10 = vunpack.i.l.bf16 %v1710_v41  ;;  %v1672_v44 = vunpack.i.h.bf16 %v2339_v16 }
 0x193   : > { %v830_v25 = vsel %vm805_vm6, %v822_v46, %v1706_v51  ;;  %v831_v58 = vsel %vm805_vm6, %v823_v22, %v1707_v55  ;;  %v1671_v47 = vunpack.i.l.bf16 %v2339_v16 }
 0x194   : > { %v1720_v59 = vpop.permute.xlu0 %1719  ;;  %v847_v27 = vpack.c.bf16 %v831_v58, %v830_v25  ;;  %v791_v24 = vsel %vm787_vm3, %v2116_v34, %v1712_v0  ;;  %v790_v30 = vsel %vm787_vm3, %v2158_v1, %v1711_v10  ;;  %v816_v34 = vsel %vm787_vm3, %v2268_v33, %v1696_v23 }
 0x195   : > { %v1715_v2 = vpop.permute.xlu1 %1714  ;;  %v1722_v31 = vunpack.i.h.bf16 %v1720_v59  ;;  %v1721_v35 = vunpack.i.l.bf16 %v1720_v59 }
 0x196   : > { %1089 = vmatprep.mubr.bf16.mxu1 %v847_v27  ;;  %v1717_v62 = vunpack.i.h.bf16 %v1715_v2  ;;  %v1716_v17 = vunpack.i.l.bf16 %v1715_v2 }
 0x197   : > { %1090 = vmatmul.mubr.bf16.vlgmr.msra.gmra.mrb[0].mxu1 %v846_v5  ;;  %v824_v21 = vsel %vm796_vm5, %v816_v34, %v1721_v35  ;;  %v825_v32 = vsel %vm796_vm5, %v817_v20, %v1722_v31 }
 0x198   : > { %v1725_v18 = vpop.permute.xlu0 %1724  ;;  %v799_v38 = vsel %vm796_vm5, %v790_v30, %v1716_v17  ;;  %v800_v43 = vsel %vm796_vm5, %v791_v24, %v1717_v62 }
 0x199   : > { %v1730_v61 = vpop.permute.xlu1 %1729  ;;  %v808_v52 = vsel %vm805_vm6, %v799_v38, %v1671_v47  ;;  %v809_v37 = vsel %vm805_vm6, %v800_v43, %v1672_v44  ;;  %v1727_v62 = vunpack.i.h.bf16 %v1725_v18  ;;  %v1726_v17 = vunpack.i.l.bf16 %v1725_v18 }
 0x19a   : > { %v849_v51 = vpack.c.bf16 %v809_v37, %v808_v52  ;;  %v1732_v45 = vunpack.i.h.bf16 %v1730_v61  ;;  %v1731_v23 = vunpack.i.l.bf16 %v1730_v61 }
 0x19c   : > { %v1735_v48 = vpop.permute.xlu0 %1734 }
 0x19d   : > { %v1737_v49 = vunpack.i.h.bf16 %v1735_v48  ;;  %v1736_v50 = vunpack.i.l.bf16 %v1735_v48  ;;  %v1740_v1 = vpop.permute.xlu1 %1739 }
 0x19e   : > { %v1742_v33 = vunpack.i.h.bf16 %v1740_v1  ;;  %v1741_v41 = vunpack.i.l.bf16 %v1740_v1 }
 0x19f   : > { %v832_v16 = vsel %vm805_vm6, %v824_v21, %v1736_v50  ;;  %v833_v53 = vsel %vm805_vm6, %v825_v32, %v1737_v49 }
 0x1a0   : > { %v1750_v54 = vpop.permute.xlu0 %1749  ;;  %v850_v29 = vpack.c.bf16 %v833_v53, %v832_v16  ;;  %v793_v59 = vsel %vm787_vm3, %v2185_v28, %v1742_v33  ;;  %v792_v27 = vsel %vm787_vm3, %v2125_v42, %v1741_v41 }
 0x1a1   : > { %v1745_v55 = vpop.permute.xlu1 %1744  ;;  %v1751_v18 = vunpack.i.l.bf16 %v1750_v54 }
 0x1a2   : > { %1097 = vmatprep.mubr.bf16.mxu1 %v850_v29  ;;  %v1747_v46 = vunpack.i.h.bf16 %v1745_v55  ;;  %v1746_v22 = vunpack.i.l.bf16 %v1745_v55 }
 0x1a3   : > { %1098 = vmatmul.mubr.bf16.gmra.mrb[4].mxu1 %v849_v51  ;;  %v820_v53 = vsel %vm787_vm3, %v2316_v3, %v1751_v18 }
 0x1a4   : > { %v1755_v57 = vpop.permute.xlu0 %1754  ;;  %v801_v2 = vsel %vm796_vm5, %v792_v27, %v1746_v22  ;;  %v802_v5 = vsel %vm796_vm5, %v793_v59, %v1747_v46 }
 0x1a5   : > { %v1757_v19 = vunpack.i.h.bf16 %v1755_v57  ;;  %v1756_v25 = vunpack.i.l.bf16 %v1755_v57  ;;  %v1770_v58 = vpop.permute.xlu1 %1769  ;;  %v810_v38 = vsel %vm805_vm6, %v801_v2, %v1731_v23  ;;  %v811_v43 = vsel %vm805_vm6, %v802_v5, %v1732_v45  ;;  %v1821_v45 = vld [vmem:[%s2495_s3 + $0x8] sm:$0xff]  }
 0x1a6   : > { %v1772_v47 = vunpack.i.h.bf16 %v1770_v58  ;;  %v1771_v61 = vunpack.i.l.bf16 %v1770_v58  ;;  %v852_v1 = vpack.c.bf16 %v811_v43, %v810_v38 }
 0x1a7   : > { %v819_v0 = vsel %vm787_vm3, %v2313_v60, %v1757_v19  ;;  %v818_v10 = vsel %vm787_vm3, %v2297_v56, %v1756_v25  ;;  %v1752_v60 = vunpack.i.h.bf16 %v1750_v54 }
 0x1a8   : > { %v1760_v24 = vpop.permute.xlu0 %1759  ;;  %v826_v42 = vsel %vm796_vm5, %v818_v10, %v1726_v17  ;;  %v827_v35 = vsel %vm796_vm5, %v819_v0, %v1727_v62  ;;  %v795_v54 = vsel %vm787_vm3, %v2179_v26, %v1772_v47  ;;  %v794_v29 = vsel %vm787_vm3, %v2240_v63, %v1771_v61  ;;  %v1820_v10 = vld [vmem:[%s2495_s3] sm:$0xff]  }
 0x1a9   : > { %v1762_v30 = vunpack.i.h.bf16 %v1760_v24  ;;  %v1761_v28 = vunpack.i.l.bf16 %v1760_v24  ;;  %v1775_v31 = vpop.permute.xlu1 %1774  ;;  %v821_v16 = vsel %vm787_vm3, %v2332_v15, %v1752_v60  ;;  %1612 = vmatprep.subr.bf16.mxu1 %v1820_v10  ;;  %v1402_v24 = vld [vmem:[%s2499_s7] ss:$0 sm:$0xff] }
 0x1aa   : > { %v1777_v34 = vunpack.i.h.bf16 %v1775_v31  ;;  %v1776_v49 = vunpack.i.l.bf16 %v1775_v31  ;;  %1613 = vmatpush3.bf16.msra.mxu1 %v1820_v10 }
 0x1ab   : > { %v834_v44 = vsel %vm805_vm6, %v826_v42, %v1761_v28  ;;  %v835_v56 = vsel %vm805_vm6, %v827_v35, %v1762_v30  ;;  %1614 = vmatprep.subr.bf16.mxu1 %v1821_v45 }
 0x1ac   : > { %v1765_v48 = vpop.permute.xlu0 %1764  ;;  %v853_v20 = vpack.c.bf16 %v835_v56, %v834_v44  ;;  %v803_v51 = vsel %vm796_vm5, %v794_v29, %v1776_v49  ;;  %v804_v33 = vsel %vm796_vm5, %v795_v54, %v1777_v34 }
 0x1ad   : > { %v1785_v50 = vpop.permute.xlu1 %1784  ;;  %v1767_v21 = vunpack.i.h.bf16 %v1765_v48  ;;  %v1766_v32 = vunpack.i.l.bf16 %v1765_v48 }
 0x1ae   : > { %v1787_v52 = vunpack.i.h.bf16 %v1785_v50  ;;  %v1786_v37 = vunpack.i.l.bf16 %v1785_v50  ;;  %1105 = vmatprep.mubr.bf16.mxu1 %v853_v20  ;;  %1615 = vmatpush3.bf16.msra.mxu1 %v1821_v45 }
 0x1af   : > { %1106 = vmatmul.mubr.bf16.gmra.mrb[8].mxu1 %v852_v1  ;;  %v828_v22 = vsel %vm796_vm5, %v820_v53, %v1766_v32  ;;  %v829_v15 = vsel %vm796_vm5, %v821_v16, %v1767_v21 }
 0x1b0   : > { %v1780_v55 = vpop.permute.xlu0 %1779  ;;  %v812_v57 = vsel %vm805_vm6, %v803_v51, %v1786_v37  ;;  %v813_v3 = vsel %vm805_vm6, %v804_v33, %v1787_v52 }
 0x1b1   : > { %v1782_v41 = vunpack.i.h.bf16 %v1780_v55  ;;  %v1781_v46 = vunpack.i.l.bf16 %v1780_v55  ;;  %v855_v25 = vpack.c.bf16 %v813_v3, %v812_v57 }
 0x1b3   : > { %v836_v26 = vsel %vm805_vm6, %v828_v22, %v1781_v46  ;;  %v837_v19 = vsel %vm805_vm6, %v829_v15, %v1782_v41 }
 0x1b4   : > { %v856_v63 = vpack.c.bf16 %v837_v19, %v836_v26 }
 0x1b6   : > { %1113 = vmatprep.mubr.bf16.mxu1 %v856_v63 }
 0x1b7   : > { %1114 = vmatmul.mubr.bf16.gmra.mrb[12].mxu1 %v855_v25 }
 0x1ed   : > { %v1606_v58 = vpop.f32.mrb[8].mxu0 }
 0x1ee   : > { %v1156_v59 = vpop.f32.mrb[9].mxu0 }
 0x1ef   : > { %v1607_v27 = vpop.f32.mrb[10].mxu0 }
 0x1f0   : > { %v1159_v2 = vpop.f32.mrb[11].mxu0 }
 0x1f5   : > { %v1610_v5 = vpop.f32.mrb[12].mxu0 }
 0x1f6   : > { %v1172_v0 = vpop.f32.mrb[13].mxu0 }
 0x1f7   : > { %v1611_v62 = vpop.f32.mrb[14].mxu0 }
 0x1f8   : > { %v1175_v17 = vpop.f32.mrb[15].mxu0 }
 0x26a   : > { %v1522_v23 = vpop.f32.mrb[0].mxu1 }
 0x26b   : > { %v1523_v30 = vpop.f32.mrb[1].mxu1 }
 0x26c   : > { %v1524_v28 = vadd.f32 %v1523_v30, %v1522_v23  ;;  %v1525_v31 = vpop.f32.mrb[2].mxu1 }
 0x26d   : > { %v1526_v42 = vpop.f32.mrb[3].mxu1 }
 0x26e   : > { %v1092_v35 = vadd.f32 %v1524_v28, %v1402_v24  ;;  %v1527_v38 = vadd.f32 %v1526_v42, %v1525_v31 }
 0x270   : > { %v1157_v43 = vadd.f32 %v1156_v59, %v1092_v35  ;;  %v1095_v60 = vadd.f32 %v1527_v38, %v1402_v24 }
 0x272   : > { %v1160_v44 = vadd.f32 %v1159_v2, %v1095_v60  ;;  %v1187_v56 = vmax.f32 %v1157_v43, 0.0 }
 0x274   : > { %v1188_v18 = vmax.f32 %v1160_v44, 0.0 }
 0x276   : > { %v1195_v47 = vpack.c.bf16 %v1188_v18, %v1187_v56  ;;  %v1528_v61 = vpop.f32.mrb[4].mxu1 }
 0x277   : > { %v1529_v48 = vpop.f32.mrb[5].mxu1 }
 0x278   : > { %v1530_v20 = vadd.f32 %v1529_v48, %v1528_v61  ;;  %v1531_v34 = vpop.f32.mrb[6].mxu1  ;;  %1616 = vmatprep.mubr.msk.bf16.mxu1 %vm787_vm3, %v1195_v47 }
 0x279   : > { %v1532_v49 = vpop.f32.mrb[7].mxu1 }
 0x27a   : > { %v1100_v50 = vadd.f32 %v1530_v20, %v1402_v24  ;;  %v1533_v1 = vadd.f32 %v1532_v49, %v1531_v34 }
 0x27c   : > { %v1165_v21 = vadd.f32 %v1606_v58, %v1100_v50  ;;  %v1103_v32 = vadd.f32 %v1533_v1, %v1402_v24 }
 0x27e   : > { %v1168_v52 = vadd.f32 %v1607_v27, %v1103_v32  ;;  %v1189_v37 = vmax.f32 %v1165_v21, 0.0 }
 0x280   : > { %v1190_v16 = vmax.f32 %v1168_v52, 0.0 }
 0x282   : > { %v1196_v53 = vpack.c.bf16 %v1190_v16, %v1189_v37  ;;  %v1534_v54 = vpop.f32.mrb[8].mxu1 }
 0x283   : > { %v1535_v29 = vpop.f32.mrb[9].mxu1 }
 0x284   : > { %v1536_v55 = vadd.f32 %v1535_v29, %v1534_v54  ;;  %v1537_v51 = vpop.f32.mrb[10].mxu1  ;;  %1617 = vmatmul.mubr.msk.bf16.vlgmr.msra.gmra.mrb[16].mxu1 %vm787_vm3, %v1196_v53 }
 0x285   : > { %v1538_v33 = vpop.f32.mrb[11].mxu1 }
 0x286   : > { %v1108_v41 = vadd.f32 %v1536_v55, %v1402_v24  ;;  %v1539_v46 = vadd.f32 %v1538_v33, %v1537_v51 }
 0x288   : > { %v1173_v22 = vadd.f32 %v1172_v0, %v1108_v41  ;;  %v1111_v15 = vadd.f32 %v1539_v46, %v1402_v24 }
 0x28a   : > { %v1176_v57 = vadd.f32 %v1175_v17, %v1111_v15  ;;  %v1540_v3 = vpop.f32.mrb[12].mxu1  ;;  %v1191_v19 = vmax.f32 %v1173_v22, 0.0 }
 0x28b   : > { %v1541_v26 = vpop.f32.mrb[13].mxu1 }
 0x28c   : > { %v1192_v63 = vmax.f32 %v1176_v57, 0.0  ;;  %v1542_v25 = vadd.f32 %v1541_v26, %v1540_v3  ;;  %v1543_v58 = vpop.f32.mrb[14].mxu1 }
 0x28d   : > { %v1544_v59 = vpop.f32.mrb[15].mxu1 }
 0x28e   : > { %v1197_v27 = vpack.c.bf16 %v1192_v63, %v1191_v19  ;;  %v1116_v2 = vadd.f32 %v1542_v25, %v1402_v24  ;;  %v1545_v10 = vadd.f32 %v1544_v59, %v1543_v58 }
 0x290   : > { %v1181_v45 = vadd.f32 %v1610_v5, %v1116_v2  ;;  %v1119_v23 = vadd.f32 %v1545_v10, %v1402_v24  ;;  %1620 = vmatprep.mubr.msk.bf16.mxu1 %vm787_vm3, %v1197_v27 }
 0x292   : > { %v1184_v30 = vadd.f32 %v1611_v62, %v1119_v23  ;;  %v1193_v0 = vmax.f32 %v1181_v45, 0.0 }
 0x294   : > { %v1194_v28 = vmax.f32 %v1184_v30, 0.0 }
 0x296   : > { %v1198_v17 = vpack.c.bf16 %v1194_v28, %v1193_v0 }
 0x298   : > { %1621 = vmatmul.mubr.msk.bf16.gmra.mrb[20].mxu1 %vm787_vm3, %v1198_v17 }
 0x357   : > { %v1618_v31 = vpop.f32.mrb[16].mxu1 }
 0x358   : > { %v1261_v42 = vpop.f32.mrb[17].mxu1  ;;  %v1270_v38 = vadd.f32 %v1618_v31, %v1458_v11 }
 0x359   : > { %v1619_v35 = vpop.f32.mrb[18].mxu1  ;;  %v1262_v62 = vadd.f32 %v1454_v6, %v1261_v42 }
 0x35a   : > { %v1273_v5 = vadd.f32 %v1619_v35, %v1459_v12  ;;  %v1264_v24 = vpop.f32.mrb[19].mxu1 }
 0x35b   : > { %v1265_v43 = vadd.f32 %v1455_v7, %v1264_v24 }
 0x35c   : > { %v1476_v60 = vpack.c.bf16 %v1273_v5, %v1270_v38 }
 0x35d   : > { %v1471_v44 = vpack.c.bf16 %v1265_v43, %v1262_v62 }
 0x35e   : > { %1491 = vst [vmem:[%s298_s26 + $0x8] sm:$0xff] %v1476_v60  }
 0x35f   : > { %1472 = vst [vmem:[%s298_s26] sm:$0xff] %v1471_v44  }
 0x36b   : > { %v1622_v56 = vpop.f32.mrb[20].mxu1 }
 0x36c   : > { %v1277_v18 = vpop.f32.mrb[21].mxu1  ;;  %v1286_v8 = vadd.f32 %v1622_v56, %v1466_v39 }
 0x36d   : > { %v1623_v11 = vpop.f32.mrb[22].mxu1  ;;  %v1278_v4 = vadd.f32 %v1462_v13, %v1277_v18 }
 0x36e   : > { %v1289_v6 = vadd.f32 %v1623_v11, %v1467_v40  ;;  %v1280_v12 = vpop.f32.mrb[23].mxu1 }
 0x36f   : > { %v1281_v7 = vadd.f32 %v1463_v14, %v1280_v12 }
 0x370   : > { %v1486_v47 = vpack.c.bf16 %v1289_v6, %v1286_v8 }
 0x371   : > { %v1481_v61 = vpack.c.bf16 %v1281_v7, %v1278_v4 }
 0x372   : > { %1493 = vst [vmem:[%s298_s26 + $0x18] sm:$0xff] %v1486_v47  }
 0x373   : > { %1492 = vst [vmem:[%s298_s26 + $0x10] sm:$0xff] %v1481_v61  }
 0x374   : > { %1835 = shalt.err (!%p1832_p3)
}
 0x375   : > { %s1836_s23 = scalar_lea.hbm %s2445_s18, 512  ;;  %s1840_s13 = scalar_lea.hbm %s2500_s8, 2048 }
 0x376   : > { %p1837_p4 = scmp.ne.s32.totalorder %s2445_s18, %s1836_s23  ;;  %p1841_p9 = scmp.lt.u32.totalorder %s2445_s18, %s2500_s8 }
 0x377   : > { %p1842_p10 = scmp.lt.u32.totalorder %s1840_s13, %s1836_s23  ;;  %p1844_p12 = scmp.lt.u32.totalorder %s1836_s23, %s2445_s18 }
 0x378   : > { %p1838_p7 = pnand %p1837_p4, %p1975_p5 }
 0x379   : > { %p1843_p11 = por %p1842_p10, %p1841_p9 }
 0x37a   : > { %p1839_p8 = pneg %p1838_p7 }
 0x37b   : > { %p1845_p13 = por %p1844_p12, %p1843_p11 }
 0x37d   : > { %p1846_p0 = pnand %p1845_p13, %p1839_p8 }
 0x37f   : > { %1849 = shalt.err (!%p1846_p0)
}
 0x380   : > { %s1891_s19 = smov 4  }
 0x381   : > { %1624 = dma.vmem_to_hbm [thread:$0]  (%p1975_p5), %s2440_s12, 512, %s2445_s18, %s2449_s9, %s1889_s25, %s1889_s25, %s1891_s19  }
 0x382 PF: > { %p1630_p1 = scmp.ge.s32.totalorder %s1884_s30, 2  ;;  %s1337_s20 = sand.u32 1, %s1872_s27  }
 0x383   : > { %s1338_s21 = scalar_lea.sflag [#allocation3], %s1337_s20 }
 0x384   : > { %p1627_p2 = pnand %p1630_p1, %p1979_p6 }
 0x386   : > { %1867 = dma.done.wait (!%p1627_p2), %s1338_s21, 512  }
 0x387   : > { %1869 = vsyncadd (!%p1627_p2), %s1338_s21, 4294966784  ;;  %p18_p3 = scmp.ge.s32.totalorder %s1962_s11, 6   ;;  %s2505_s27 = smov %s1876_s28 }
 0x388   : > { %s2506_s28 = smov %s1880_s29  ;;  %s2507_s29 = smov %s1973_s14 }
 0x389   : > { %s2508_s30 = smov %s1962_s11  ;;  %20 = sbr.rel (!%p18_p3) target bundleno = 3 (0x3), region = 87 }
 0x390   :  { %1343 = vsyncpa [#allocation3], 1 }
 0x391   :  { %1345 = vsyncpa [#allocation3 + $0x1], 1 }

</bundles_post_ra>
